<compile_context>
chip_gen: v7x
topology: tpu7x:2x2x1
jax: 0.10.0
libtpu: 0.0.40
codegen_flags: <defaults>
</compile_context>

<pallas_src>
import jax
import jax.numpy as jnp
from jax.experimental import pallas as pl
from jax.experimental.pallas import tpu as pltpu

D1, D2, H, OUT = 10, 20, 2, 2          # Linear(10->2), Linear(20->2), cat -> Linear(4->2)
HID = 2 * H                            # concatenated hidden width (4)

MIN_TB = 8                             # f32 sublane granularity
MAX_TB = 4096                          # large batch tile (review: sweep 2048-8192)


def _cdiv(a, b):
    return -(-a // b)


def _round_up(n, m):
    return ((n + m - 1) // m) * m


def _choose_tile(B):
    """Pick (batch_tile, padded_batch): big tiles, but >=2 grid steps when possible."""
    bp8 = _round_up(B, MIN_TB)
    if bp8 <= MIN_TB:                  # tiny batch: single 8-row step
        return MIN_TB, MIN_TB
    n_steps = max(2, _cdiv(bp8, MAX_TB))          # >=2 steps feeds both v7x TensorCores
    tb = min(MAX_TB, _round_up(_cdiv(bp8, n_steps), MIN_TB))
    bp = _round_up(bp8, tb)
    return tb, bp


def _ensemble_kernel(x1_ref, x2_ref, w1a_ref, w1b_ref, b1_ref, wc_ref, bc_ref, o_ref):
    # Two slim dots replace branchA/branchB matmuls + concat:
    #   hidden lanes 0:2 come from x1@W1a, lanes 2:4 from x2@W1b (disjoint columns).
    h = jnp.dot(x1_ref[...], w1a_ref[...], preferred_element_type=jnp.float32)
    h = h + jnp.dot(x2_ref[...], w1b_ref[...], preferred_element_type=jnp.float32)
    h = jnp.maximum(h + b1_ref[...], 0.0)                      # ReLU(cat(a1, a2))
    o = jnp.dot(h, wc_ref[...], preferred_element_type=jnp.float32) + bc_ref[...]
    o_ref[...] = o.astype(o_ref.dtype)                         # (TB, 2) slim writeback


def pack_params(params):
    """One-time packing into kernel-resident arrays (stored [in, out])."""
    wA, bA, wB, bB, wC, bC = (params[k] for k in ("wA", "bA", "wB", "bB", "wC", "bC"))

    w1a = jnp.zeros((D1, HID), jnp.float32).at[:, 0:H].set(wA)       # x1 -> hidden[0:2]
    w1b = jnp.zeros((D2, HID), jnp.float32).at[:, H:HID].set(wB)     # x2 -> hidden[2:4]
    b1 = jnp.concatenate([bA, bB]).reshape(1, HID).astype(jnp.float32)
    wc = wC.astype(jnp.float32)                                      # (4, 2)
    bc = bC.reshape(1, OUT).astype(jnp.float32)
    return dict(w1a=w1a, w1b=w1b, b1=b1, wc=wc, bc=bc)


def _xla_forward(x1, x2, packed):
    """Plain-XLA fallback for tiny batches (same math as the kernel)."""
    h = jax.nn.relu(x1 @ packed["w1a"] + x2 @ packed["w1b"] + packed["b1"])
    return h @ packed["wc"] + packed["bc"]


def my_ensemble_forward(x1, x2, packed, *, min_pallas_batch=0):
    """x1: [B, 10], x2: [B, 20] float32 -> [B, 2] float32."""
    B = x1.shape[0]
    assert x2.shape[0] == B

    if B < min_pallas_batch:           # small-batch XLA fallback (disabled by default)
        return _xla_forward(x1, x2, packed)

    tb, bp = _choose_tile(B)
    if bp != B:                        # pad batch only when not already tile-aligned
        x1 = jnp.pad(x1, ((0, bp - B), (0, 0)))
        x2 = jnp.pad(x2, ((0, bp - B), (0, 0)))

    out = pl.pallas_call(
        _ensemble_kernel,
        out_shape=jax.ShapeDtypeStruct((bp, OUT), jnp.float32),
        grid=(bp // tb,),
        in_specs=[
            pl.BlockSpec((tb, D1), lambda i: (i, 0)),      # x1 tile  (contiguous, no padding)
            pl.BlockSpec((tb, D2), lambda i: (i, 0)),      # x2 tile
            pl.BlockSpec((D1, HID), lambda i: (0, 0)),     # W1a (resident)
            pl.BlockSpec((D2, HID), lambda i: (0, 0)),     # W1b (resident)
            pl.BlockSpec((1, HID), lambda i: (0, 0)),      # branch biases
            pl.BlockSpec((HID, OUT), lambda i: (0, 0)),    # classifier weight (slim)
            pl.BlockSpec((1, OUT), lambda i: (0, 0)),      # classifier bias
        ],
        out_specs=pl.BlockSpec((tb, OUT), lambda i: (i, 0)),
        compiler_params=pltpu.CompilerParams(
            dimension_semantics=("parallel",)),            # batch tiles shard over v7x's 2 TCs
    )(x1, x2, packed["w1a"], packed["w1b"], packed["b1"], packed["wc"], packed["bc"])

    return out[:B] if bp != B else out


def init_params(key):
    """Deterministic synthetic parameters matching the PyTorch module's shapes."""
    ks = jax.random.split(key, 6)
    # stored as [in_features, out_features] (transpose of torch's [out, in])
    wA = jax.random.normal(ks[0], (D1, H), jnp.float32) * 0.3
    bA = jax.random.normal(ks[1], (H,), jnp.float32) * 0.1
    wB = jax.random.normal(ks[2], (D2, H), jnp.float32) * 0.3
    bB = jax.random.normal(ks[3], (H,), jnp.float32) * 0.1
    wC = jax.random.normal(ks[4], (HID, OUT), jnp.float32) * 0.3
    bC = jax.random.normal(ks[5], (OUT,), jnp.float32) * 0.1
    return dict(wA=wA, bA=bA, wB=wB, bB=bB, wC=wC, bC=bC)


def reference_forward(x1, x2, p):
    a1 = x1 @ p["wA"] + p["bA"]
    a2 = x2 @ p["wB"] + p["bB"]
    h = jax.nn.relu(jnp.concatenate([a1, a2], axis=1))
    return h @ p["wC"] + p["bC"]


if __name__ == "__main__":
    key = jax.random.PRNGKey(0)
    k_p, k1, k2 = jax.random.split(key, 3)
    params = init_params(k_p)
    packed = pack_params(params)       # one-time weight packing (resident across calls)

    # small batch (single grid step, batch padded 4 -> 8)
    B = 4
    x1 = jax.random.normal(k1, (B, D1), jnp.float32)
    x2 = jax.random.normal(k2, (B, D2), jnp.float32)
    out = jax.block_until_ready(my_ensemble_forward(x1, x2, packed))
    ref = reference_forward(x1, x2, params)
    assert out.shape == (B, OUT)
    assert jnp.allclose(out, ref, atol=1e-5, rtol=1e-5)

    # larger batch: exercises multi-step grid (2 steps of 520 rows, no padding copy)
    B2 = 1040
    k3, k4 = jax.random.split(k1)
    x1b = jax.random.normal(k3, (B2, D1), jnp.float32)
    x2b = jax.random.normal(k4, (B2, D2), jnp.float32)
    outb = jax.block_until_ready(my_ensemble_forward(x1b, x2b, packed))
    refb = reference_forward(x1b, x2b, params)
    assert outb.shape == (B2, OUT)
    assert jnp.allclose(outb, refb, atol=1e-5, rtol=1e-5)

    # odd, non-tile-aligned batch (exercises the padding + slice path)
    B3 = 333
    k5, k6 = jax.random.split(k2)
    x1c = jax.random.normal(k5, (B3, D1), jnp.float32)
    x2c = jax.random.normal(k6, (B3, D2), jnp.float32)
    outc = jax.block_until_ready(my_ensemble_forward(x1c, x2c, packed))
    refc = reference_forward(x1c, x2c, params)
    assert outc.shape == (B3, OUT)
    assert jnp.allclose(outc, refc, atol=1e-5, rtol=1e-5)

    print("KERNEL_OK")
</pallas_src>

<mosaic_0001>
module attributes {stable_mosaic.version = 11 : i64} {
  func.func @_ensemble_kernel(%arg0: i32, %arg1: memref<8x10xf32, #tpu.memory_space<vmem>>, %arg2: memref<8x20xf32, #tpu.memory_space<vmem>>, %arg3: memref<10x4xf32, #tpu.memory_space<vmem>>, %arg4: memref<20x4xf32, #tpu.memory_space<vmem>>, %arg5: memref<1x4xf32, #tpu.memory_space<vmem>>, %arg6: memref<4x2xf32, #tpu.memory_space<vmem>>, %arg7: memref<1x2xf32, #tpu.memory_space<vmem>>, %arg8: memref<8x2xf32, #tpu.memory_space<vmem>>) attributes {dimension_semantics = [#tpu.dimension_semantics<parallel>], iteration_bounds = array<i64: 1>, scalar_prefetch = 0 : i64, scratch_operands = 0 : i64, tpu.core_type = #tpu.core_type<tc>, window_params = [{transform_indices = @transform_0, window_bounds = array<i64: 8, 10>}, {transform_indices = @transform_1, window_bounds = array<i64: 8, 20>}, {pipeline_mode = #tpu.pipeline_mode<synchronous>, transform_indices = @transform_2, window_bounds = array<i64: 10, 4>}, {pipeline_mode = #tpu.pipeline_mode<synchronous>, transform_indices = @transform_3, window_bounds = array<i64: 20, 4>}, {pipeline_mode = #tpu.pipeline_mode<synchronous>, transform_indices = @transform_4, window_bounds = array<i64: 1, 4>}, {pipeline_mode = #tpu.pipeline_mode<synchronous>, transform_indices = @transform_5, window_bounds = array<i64: 4, 2>}, {pipeline_mode = #tpu.pipeline_mode<synchronous>, transform_indices = @transform_6, window_bounds = array<i64: 1, 2>}, {transform_indices = @transform_7, window_bounds = array<i64: 8, 2>}]} {
    %c0 = arith.constant 0 : index
    %c0_0 = arith.constant 0 : index
    %0 = vector.load %arg1[%c0, %c0_0] : memref<8x10xf32, #tpu.memory_space<vmem>>, vector<8x10xf32>
    %c0_1 = arith.constant 0 : index
    %c0_2 = arith.constant 0 : index
    %1 = vector.load %arg3[%c0_1, %c0_2] : memref<10x4xf32, #tpu.memory_space<vmem>>, vector<10x4xf32>
    %cst = arith.constant dense<0.000000e+00> : vector<8x4xf32>
    %2 = tpu.matmul %0, %1, %cst {dimension_numbers = #tpu.dot_dimension_numbers<[1], [0], [0], [1], [0, 0, 1, 1], [], []>} : vector<8x10xf32>, vector<10x4xf32>, vector<8x4xf32> -> vector<8x4xf32>
    %c0_3 = arith.constant 0 : index
    %c0_4 = arith.constant 0 : index
    %3 = vector.load %arg2[%c0_3, %c0_4] : memref<8x20xf32, #tpu.memory_space<vmem>>, vector<8x20xf32>
    %c0_5 = arith.constant 0 : index
    %c0_6 = arith.constant 0 : index
    %4 = vector.load %arg4[%c0_5, %c0_6] : memref<20x4xf32, #tpu.memory_space<vmem>>, vector<20x4xf32>
    %cst_7 = arith.constant dense<0.000000e+00> : vector<8x4xf32>
    %5 = tpu.matmul %3, %4, %cst_7 {dimension_numbers = #tpu.dot_dimension_numbers<[1], [0], [0], [1], [0, 0, 1, 1], [], []>} : vector<8x20xf32>, vector<20x4xf32>, vector<8x4xf32> -> vector<8x4xf32>
    %6 = arith.addf %2, %5 : vector<8x4xf32>
    %c0_8 = arith.constant 0 : index
    %c0_9 = arith.constant 0 : index
    %7 = vector.load %arg5[%c0_8, %c0_9] : memref<1x4xf32, #tpu.memory_space<vmem>>, vector<1x4xf32>
    %8 = vector.broadcast %7 : vector<1x4xf32> to vector<8x4xf32>
    %9 = arith.addf %6, %8 : vector<8x4xf32>
    %cst_10 = arith.constant 0.000000e+00 : f32
    %10 = vector.broadcast %cst_10 : f32 to vector<8x4xf32>
    %11 = arith.maximumf %9, %10 : vector<8x4xf32>
    %c0_11 = arith.constant 0 : index
    %c0_12 = arith.constant 0 : index
    %12 = vector.load %arg6[%c0_11, %c0_12] : memref<4x2xf32, #tpu.memory_space<vmem>>, vector<4x2xf32>
    %cst_13 = arith.constant dense<0.000000e+00> : vector<8x2xf32>
    %13 = tpu.matmul %11, %12, %cst_13 {dimension_numbers = #tpu.dot_dimension_numbers<[1], [0], [0], [1], [0, 0, 1, 1], [], []>} : vector<8x4xf32>, vector<4x2xf32>, vector<8x2xf32> -> vector<8x2xf32>
    %c0_14 = arith.constant 0 : index
    %c0_15 = arith.constant 0 : index
    %14 = vector.load %arg7[%c0_14, %c0_15] : memref<1x2xf32, #tpu.memory_space<vmem>>, vector<1x2xf32>
    %15 = vector.broadcast %14 : vector<1x2xf32> to vector<8x2xf32>
    %16 = arith.addf %13, %15 : vector<8x2xf32>
    %c0_16 = arith.constant 0 : index
    %c0_17 = arith.constant 0 : index
    %17 = vector.load %arg8[%c0_16, %c0_17] : memref<8x2xf32, #tpu.memory_space<vmem>>, vector<8x2xf32>
    tpu.vector_store %arg8[%c0_16, %c0_17], %16 {strides = array<i32>} : memref<8x2xf32, #tpu.memory_space<vmem>>, vector<8x2xf32>,
    return
  }
  func.func @transform_0(%arg0: i32) -> (i32, i32) {
    %c0_i32 = arith.constant 0 : i32
    %c0_i32_0 = arith.constant 0 : i32
    return %arg0, %c0_i32 : i32, i32
  }
  func.func @transform_1(%arg0: i32) -> (i32, i32) {
    %c0_i32 = arith.constant 0 : i32
    %c0_i32_0 = arith.constant 0 : i32
    return %arg0, %c0_i32 : i32, i32
  }
  func.func @transform_2(%arg0: i32) -> (i32, i32) {
    %c0_i32 = arith.constant 0 : i32
    %c0_i32_0 = arith.constant 0 : i32
    %c0_i32_1 = arith.constant 0 : i32
    return %c0_i32, %c0_i32_0 : i32, i32
  }
  func.func @transform_3(%arg0: i32) -> (i32, i32) {
    %c0_i32 = arith.constant 0 : i32
    %c0_i32_0 = arith.constant 0 : i32
    %c0_i32_1 = arith.constant 0 : i32
    return %c0_i32, %c0_i32_0 : i32, i32
  }
  func.func @transform_4(%arg0: i32) -> (i32, i32) {
    %c0_i32 = arith.constant 0 : i32
    %c0_i32_0 = arith.constant 0 : i32
    %c0_i32_1 = arith.constant 0 : i32
    return %c0_i32, %c0_i32_0 : i32, i32
  }
  func.func @transform_5(%arg0: i32) -> (i32, i32) {
    %c0_i32 = arith.constant 0 : i32
    %c0_i32_0 = arith.constant 0 : i32
    %c0_i32_1 = arith.constant 0 : i32
    return %c0_i32, %c0_i32_0 : i32, i32
  }
  func.func @transform_6(%arg0: i32) -> (i32, i32) {
    %c0_i32 = arith.constant 0 : i32
    %c0_i32_0 = arith.constant 0 : i32
    %c0_i32_1 = arith.constant 0 : i32
    return %c0_i32, %c0_i32_0 : i32, i32
  }
  func.func @transform_7(%arg0: i32) -> (i32, i32) {
    %c0_i32 = arith.constant 0 : i32
    %c0_i32_0 = arith.constant 0 : i32
    return %arg0, %c0_i32 : i32, i32
  }
}

</mosaic_0001>

<bundles_post_ra>
// kernel: tpu_custom_call.1
= control target key start
LH: loop header
LB: loop body
LE: loop exit
PB: predicated region body
PF: predicated region fallthrough
CT: control target
= control target key end

     0   :  { %vm115_vm0 = vcmask 1041408   ;;  %v338_v0 = vmov 0.0|0.0   ;;  %vm339_vm1 = vmmov 1   ;;  %vm340_vm3 = vmmov 0   ;;  %s418_s3 = inlined_call_operand.vmem [shape: f32[20,4], index: 3, kind: input, shape index: {}]   ;;  %s419_s2 = inlined_call_operand.vmem [shape: f32[10,4], index: 2, kind: input, shape index: {}]   ;;  %s420_s0 = inlined_call_operand.vmem [shape: f32[8,10], index: 0, kind: input, shape index: {}]   ;;  %s421_s1 = inlined_call_operand.vmem [shape: f32[8,20], index: 1, kind: input, shape index: {}]   ;;  %s422_s5 = inlined_call_operand.vmem [shape: f32[4,2], index: 5, kind: input, shape index: {}]   ;;  %s423_s4 = inlined_call_operand.vmem [shape: f32[1,4], index: 4, kind: input, shape index: {}]   ;;  %s424_s6 = inlined_call_operand.vmem [shape: f32[1,2], index: 6, kind: input, shape index: {}]   ;;  %s425_s7 = inlined_call_operand.vmem [shape: f32[8,2], index: 7, kind: output, shape index: {}]  }
   0x1   :  { %327 = vmatprep.subr.bf16.mxu0 %v338_v0  ;;  %v30_v1 = vld [vmem:[%s418_s3] sm:$0xff]  ;;  %v31_v2 = vld [vmem:[%s418_s3 + $0x8] sm:$0xff]  ;;  %330 = vmatprep.subr.bf16.mxu1 %v338_v0  ;;  %vm332_vm2 = vmpackc.low %vm115_vm0, %vm339_vm1  ;;  %v341_v6 = vmov 0.0   ;;  %vm37_vm4 = vcmask 1043456   ;;  %vm111_vm5 = vcmask 80896   ;;  %vm33_vm6 = vcmask 162816  }
   0x2   :  { %v27_v3 = vld [vmem:[%s419_s2] sm:$0xff]  ;;  %v328_v4 = vpack.c.bf16 %v31_v2, %v30_v1  ;;  %v28_v5 = vld [vmem:[%s419_s2 + $0x8] sm:$0x3]  ;;  %319 = vmatprep.mubr.msk.f32.mxu1 %vm340_vm3, %v341_v6  ;;  %312 = vmatprep.mubr.msk.f32.mxu0 %vm340_vm3, %v341_v6  ;;  %v32_v8 = vld [vmem:[%s418_s3 + $0x10] sm:$0xf]  ;;  %vm206_vm7 = vcmask 31744  }
   0x3   :  { %v331_v7 = vpack.c.bf16 %v28_v5, %v27_v3  ;;  %v26_v9 = vld [vmem:[%s420_s0] sm:$0xff]  ;;  %vm283_vm8 = vcmask 15360  }
   0x4   :  { %329 = vmatpush3.bf16.msra.mxu0 %v328_v4  ;;  %v29_v10 = vld [vmem:[%s421_s1] sm:$0xff] }
   0x5   :  { %333 = vmatpush3.bf16.msk.msra.mxu1 %vm332_vm2, %v331_v7  ;;  %310 = vmatprep.subr.mxu0 %v341_v6  ;;  %v198_v11 = vld [vmem:[%s422_s5] sm:$0xf] }
   0x6   :  { %322 = vmatprep.subr.mxu1 %v341_v6  ;;  %v293_v14 = vld [vmem:[%s423_s4] ss:$0 sm:$0xff] }
   0x7   :  { %v294_v20 = vld [vmem:[%s424_s6] ss:$0 sm:$0xff] }
   0x8   :  { %311 = vmatpush3.msk.msra.mxu0 %vm37_vm4, %v32_v8  ;;  %320 = vmatmul.mubr.msk.f32.vlgmr.msra.gmra.mrb[0].mxu1 %vm111_vm5, %v26_v9 }
   0x9   :  { %313 = vmatmul.mubr.msk.f32.vlgmr.msra.gmra.mrb[0].mxu0 %vm33_vm6, %v29_v10  ;;  %324 = vmatprep.mubr.msk.f32.mxu1 %vm340_vm3, %v341_v6 }
   0xa   :  { %323 = vmatpush3.msk.msra.mxu1 %vm37_vm4, %v198_v11 }
  0xdb   :  { %v185_v12 = vpop.f32.mrb[0].mxu1 }
  0xdc   :  { %v107_v13 = vpop.f32.mrb[0].mxu0  ;;  %v321_v15 = vpop.f32.mrb[1].mxu1 }
  0xdd   :  { %v186_v16 = vadd.f32 %v185_v12, %v107_v13  ;;  %v314_v17 = vpop.f32.mrb[1].mxu0 }
  0xdf   :  { %v196_v18 = vadd.f32 %v293_v14, %v186_v16 }
  0xe1   :  { %v197_v19 = vmax.f32 %v196_v18, 0.0 }
  0xe3   :  { %325 = vmatmul.mubr.msk.f32.vlgmr.msra.gmra.mrb[2].mxu1 %vm206_vm7, %v197_v19 }
 0x1b6   :  { %v279_v21 = vpop.f32.mrb[2].mxu1 }
 0x1b7   :  { %v280_v22 = vadd.f32 %v294_v20, %v279_v21  ;;  %v326_v23 = vpop.f32.mrb[3].mxu1 }
 0x1b9   :  { %284 = vst.msk [vmem:[%s425_s7] sm:$0xff] %vm283_vm8, %v280_v22 }

</bundles_post_ra>
